<compile_context>
chip_gen: v6e
topology: v6e:2x2x1
jax: 0.10.0
libtpu: 0.0.40
codegen_flags: <defaults>
</compile_context>

<pallas_src>
import functools

import jax
import jax.numpy as jnp
from jax import lax
from jax.experimental import pallas as pl
from jax.experimental.pallas import tpu as pltpu


def _gelu_exact(x):
    # torch.nn.GELU() default (erf-based, exact); kept in f32 (EUP/VPU path).
    return 0.5 * x * (1.0 + lax.erf(x * 0.7071067811865475))


def brick_decoder_kernel(x_ref, w1_ref, b1_ref, w2_ref, b2_ref, wh_ref, bh_ref,
                         out_ref, *, num_shapes, num_colors):
    # x tile: (TM, C) f32 -> bf16 for the MXU; accumulate in f32.
    x = x_ref[...].astype(jnp.bfloat16)

    h = jnp.dot(x, w1_ref[...], preferred_element_type=jnp.float32) + b1_ref[...]
    h = _gelu_exact(h)
    h = jnp.dot(h.astype(jnp.bfloat16), w2_ref[...],
                preferred_element_type=jnp.float32) + b2_ref[...]
    h = _gelu_exact(h)

    # Fused multihead decoder: one (TM, C) @ (C, ns+nc) matmul, then lane-slice.
    y = jnp.dot(h.astype(jnp.bfloat16), wh_ref[...],
                preferred_element_type=jnp.float32) + bh_ref[...]
    s = y[:, :num_shapes]     # (TM, ns)
    c = y[:, num_shapes:]     # (TM, nc)

    tm = s.shape[0]
    out = (s[:, :, None] * c[:, None, :]).reshape(tm, num_shapes * num_colors)
    out_ref[...] = out.astype(out_ref.dtype)


def simple_brick_decoder(x, params, *, block_batch=256):
    """x: (B, channels) f32.  params: weights stored (in, out), biases (1, out)."""
    B, C = x.shape
    ns = params["ws"].shape[1]
    nc = params["wc"].shape[1]

    # Fuse the two decoder heads into a single matmul; pre-cast weights to bf16
    # (halves weight DMA; biases / accumulation remain f32).
    w1 = params["w1"].astype(jnp.bfloat16)
    w2 = params["w2"].astype(jnp.bfloat16)
    wh = jnp.concatenate([params["ws"], params["wc"]], axis=1).astype(jnp.bfloat16)
    b1 = params["b1"].astype(jnp.float32)
    b2 = params["b2"].astype(jnp.float32)
    bh = jnp.concatenate([params["bs"], params["bc"]], axis=1).astype(jnp.float32)

    # Batch tile: multiple of 8 sublanes; pad B up to a whole number of tiles.
    tm = min(block_batch, ((B + 7) // 8) * 8)
    n_tiles = pl.cdiv(B, tm)
    Bp = n_tiles * tm
    if Bp != B:
        x = jnp.pad(x, ((0, Bp - B), (0, 0)))

    kernel = functools.partial(brick_decoder_kernel, num_shapes=ns, num_colors=nc)

    flops = 2 * Bp * C * (2 * C + ns + nc) + Bp * ns * nc
    bytes_accessed = (Bp * C * 4                          # x (f32 in HBM)
                      + (2 * C * C + C * (ns + nc)) * 2   # bf16 weights
                      + (2 * C + ns + nc) * 4             # biases
                      + Bp * ns * nc * 4)                 # output

    out = pl.pallas_call(
        kernel,
        out_shape=jax.ShapeDtypeStruct((Bp, ns * nc), jnp.float32),
        grid_spec=pltpu.PrefetchScalarGridSpec(
            num_scalar_prefetch=0,
            grid=(n_tiles,),
            in_specs=[
                pl.BlockSpec((tm, C), lambda i: (i, 0)),        # x: batch-tiled
                pl.BlockSpec((C, C), lambda i: (0, 0)),         # w1 (resident)
                pl.BlockSpec((1, C), lambda i: (0, 0)),         # b1
                pl.BlockSpec((C, C), lambda i: (0, 0)),         # w2 (resident)
                pl.BlockSpec((1, C), lambda i: (0, 0)),         # b2
                pl.BlockSpec((C, ns + nc), lambda i: (0, 0)),   # fused head W
                pl.BlockSpec((1, ns + nc), lambda i: (0, 0)),   # fused head b
            ],
            out_specs=pl.BlockSpec((tm, ns * nc), lambda i: (i, 0)),
        ),
        compiler_params=pltpu.CompilerParams(
            dimension_semantics=("parallel",),
            vmem_limit_bytes=32 * 1024 * 1024,
        ),
        cost_estimate=pl.CostEstimate(
            flops=flops,
            transcendentals=2 * Bp * C,
            bytes_accessed=bytes_accessed,
        ),
    )(x, w1, b1, w2, b2, wh, bh)

    return out[:B]


def _init_params(key, channels, num_shapes, num_colors):
    ks = jax.random.split(key, 8)
    sc = 1.0 / float(channels) ** 0.5
    u = lambda k, shape: jax.random.uniform(k, shape, jnp.float32, -sc, sc)
    return {
        "w1": u(ks[0], (channels, channels)),
        "b1": u(ks[1], (1, channels)),
        "w2": u(ks[2], (channels, channels)),
        "b2": u(ks[3], (1, channels)),
        "ws": u(ks[4], (channels, num_shapes)),
        "bs": u(ks[5], (1, num_shapes)),
        "wc": u(ks[6], (channels, num_colors)),
        "bc": u(ks[7], (1, num_colors)),
    }


def _reference(x, p):
    # Pure-f32 reference matching the PyTorch module exactly (erf GELU).
    g = lambda v: 0.5 * v * (1.0 + lax.erf(v * 0.7071067811865475))
    h = g(x @ p["w1"] + p["b1"])
    h = g(h @ p["w2"] + p["b2"])
    s = h @ p["ws"] + p["bs"]
    c = h @ p["wc"] + p["bc"]
    b = s.shape[0]
    return (s[:, :, None] * c[:, None, :]).reshape(b, -1)


if __name__ == "__main__":
    B = 24           # batch (not a tile multiple -> exercises padding + 2 grid steps)
    CHANNELS = 128   # hidden width (module default is 768; small for the demo)
    NUM_SHAPES = 8   # must equal NUM_COLORS for the module's .view to be valid
    NUM_COLORS = 8

    key = jax.random.PRNGKey(0)
    kx, kp = jax.random.split(key)
    x = jax.random.normal(kx, (B, CHANNELS), jnp.float32)
    params = _init_params(kp, CHANNELS, NUM_SHAPES, NUM_COLORS)

    out = simple_brick_decoder(x, params, block_batch=16)   # grid = (2,)
    out = jax.block_until_ready(out)

    ref = _reference(x, params)
    assert out.shape == (B, NUM_SHAPES * NUM_COLORS)
    # bf16 MXU inputs with f32 accumulation -> loosened tolerance vs f32 reference.
    assert jnp.allclose(out, ref, atol=5e-2, rtol=5e-2), \
        float(jnp.max(jnp.abs(out - ref)))

    print("KERNEL_OK")
</pallas_src>

<mosaic_0001>
module attributes {stable_mosaic.version = 11 : i64} {
  func.func @brick_decoder_kernel(%arg0: i32, %arg1: memref<16x128xf32, #tpu.memory_space<vmem>>, %arg2: memref<128x128xbf16, #tpu.memory_space<vmem>>, %arg3: memref<1x128xf32, #tpu.memory_space<vmem>>, %arg4: memref<128x128xbf16, #tpu.memory_space<vmem>>, %arg5: memref<1x128xf32, #tpu.memory_space<vmem>>, %arg6: memref<128x16xbf16, #tpu.memory_space<vmem>>, %arg7: memref<1x16xf32, #tpu.memory_space<vmem>>, %arg8: memref<16x64xf32, #tpu.memory_space<vmem>>) attributes {dimension_semantics = [#tpu.dimension_semantics<parallel>], iteration_bounds = array<i64: 2>, scalar_prefetch = 0 : i64, scratch_operands = 0 : i64, tpu.core_type = #tpu.core_type<tc>, window_params = [{transform_indices = @transform_0, window_bounds = array<i64: 16, 128>}, {pipeline_mode = #tpu.pipeline_mode<synchronous>, transform_indices = @transform_1, window_bounds = array<i64: 128, 128>}, {pipeline_mode = #tpu.pipeline_mode<synchronous>, transform_indices = @transform_2, window_bounds = array<i64: 1, 128>}, {pipeline_mode = #tpu.pipeline_mode<synchronous>, transform_indices = @transform_3, window_bounds = array<i64: 128, 128>}, {pipeline_mode = #tpu.pipeline_mode<synchronous>, transform_indices = @transform_4, window_bounds = array<i64: 1, 128>}, {pipeline_mode = #tpu.pipeline_mode<synchronous>, transform_indices = @transform_5, window_bounds = array<i64: 128, 16>}, {pipeline_mode = #tpu.pipeline_mode<synchronous>, transform_indices = @transform_6, window_bounds = array<i64: 1, 16>}, {transform_indices = @transform_7, window_bounds = array<i64: 16, 64>}]} {
    %c0 = arith.constant 0 : index
    %c0_0 = arith.constant 0 : index
    %0 = vector.load %arg1[%c0, %c0_0] : memref<16x128xf32, #tpu.memory_space<vmem>>, vector<16x128xf32>
    %1 = arith.truncf %0 : vector<16x128xf32> to vector<16x128xbf16>
    %c0_1 = arith.constant 0 : index
    %c0_2 = arith.constant 0 : index
    %2 = vector.load %arg2[%c0_1, %c0_2] : memref<128x128xbf16, #tpu.memory_space<vmem>>, vector<128x128xbf16>
    %cst = arith.constant dense<0.000000e+00> : vector<16x128xf32>
    %3 = tpu.matmul %1, %2, %cst {dimension_numbers = #tpu.dot_dimension_numbers<[1], [0], [0], [1], [0, 0, 1, 1], [], []>} : vector<16x128xbf16>, vector<128x128xbf16>, vector<16x128xf32> -> vector<16x128xf32>
    %c0_3 = arith.constant 0 : index
    %c0_4 = arith.constant 0 : index
    %4 = vector.load %arg3[%c0_3, %c0_4] : memref<1x128xf32, #tpu.memory_space<vmem>>, vector<1x128xf32>
    %5 = vector.broadcast %4 : vector<1x128xf32> to vector<16x128xf32>
    %6 = arith.addf %3, %5 : vector<16x128xf32>
    %cst_5 = arith.constant 5.000000e-01 : f32
    %7 = vector.broadcast %cst_5 : f32 to vector<16x128xf32>
    %8 = arith.mulf %7, %6 : vector<16x128xf32>
    %cst_6 = arith.constant 0.707106769 : f32
    %9 = vector.broadcast %cst_6 : f32 to vector<16x128xf32>
    %10 = arith.mulf %6, %9 : vector<16x128xf32>
    %11 = math.erf %10 : vector<16x128xf32>
    %cst_7 = arith.constant 1.000000e+00 : f32
    %12 = vector.broadcast %cst_7 : f32 to vector<16x128xf32>
    %13 = arith.addf %12, %11 : vector<16x128xf32>
    %14 = arith.mulf %8, %13 : vector<16x128xf32>
    %15 = arith.truncf %14 : vector<16x128xf32> to vector<16x128xbf16>
    %c0_8 = arith.constant 0 : index
    %c0_9 = arith.constant 0 : index
    %16 = vector.load %arg4[%c0_8, %c0_9] : memref<128x128xbf16, #tpu.memory_space<vmem>>, vector<128x128xbf16>
    %cst_10 = arith.constant dense<0.000000e+00> : vector<16x128xf32>
    %17 = tpu.matmul %15, %16, %cst_10 {dimension_numbers = #tpu.dot_dimension_numbers<[1], [0], [0], [1], [0, 0, 1, 1], [], []>} : vector<16x128xbf16>, vector<128x128xbf16>, vector<16x128xf32> -> vector<16x128xf32>
    %c0_11 = arith.constant 0 : index
    %c0_12 = arith.constant 0 : index
    %18 = vector.load %arg5[%c0_11, %c0_12] : memref<1x128xf32, #tpu.memory_space<vmem>>, vector<1x128xf32>
    %19 = vector.broadcast %18 : vector<1x128xf32> to vector<16x128xf32>
    %20 = arith.addf %17, %19 : vector<16x128xf32>
    %cst_13 = arith.constant 5.000000e-01 : f32
    %21 = vector.broadcast %cst_13 : f32 to vector<16x128xf32>
    %22 = arith.mulf %21, %20 : vector<16x128xf32>
    %cst_14 = arith.constant 0.707106769 : f32
    %23 = vector.broadcast %cst_14 : f32 to vector<16x128xf32>
    %24 = arith.mulf %20, %23 : vector<16x128xf32>
    %25 = math.erf %24 : vector<16x128xf32>
    %cst_15 = arith.constant 1.000000e+00 : f32
    %26 = vector.broadcast %cst_15 : f32 to vector<16x128xf32>
    %27 = arith.addf %26, %25 : vector<16x128xf32>
    %28 = arith.mulf %22, %27 : vector<16x128xf32>
    %29 = arith.truncf %28 : vector<16x128xf32> to vector<16x128xbf16>
    %c0_16 = arith.constant 0 : index
    %c0_17 = arith.constant 0 : index
    %30 = vector.load %arg6[%c0_16, %c0_17] : memref<128x16xbf16, #tpu.memory_space<vmem>>, vector<128x16xbf16>
    %cst_18 = arith.constant dense<0.000000e+00> : vector<16x16xf32>
    %31 = tpu.matmul %29, %30, %cst_18 {dimension_numbers = #tpu.dot_dimension_numbers<[1], [0], [0], [1], [0, 0, 1, 1], [], []>} : vector<16x128xbf16>, vector<128x16xbf16>, vector<16x16xf32> -> vector<16x16xf32>
    %c0_19 = arith.constant 0 : index
    %c0_20 = arith.constant 0 : index
    %32 = vector.load %arg7[%c0_19, %c0_20] : memref<1x16xf32, #tpu.memory_space<vmem>>, vector<1x16xf32>
    %33 = vector.broadcast %32 : vector<1x16xf32> to vector<16x16xf32>
    %34 = arith.addf %31, %33 : vector<16x16xf32>
    %35 = vector.extract_strided_slice %34 {offsets = [0, 0], sizes = [16, 8], strides = [1, 1]} : vector<16x16xf32> to vector<16x8xf32>
    %36 = vector.extract_strided_slice %34 {offsets = [0, 8], sizes = [16, 8], strides = [1, 1]} : vector<16x16xf32> to vector<16x8xf32>
    %37 = vector.shape_cast %35 : vector<16x8xf32> to vector<16x8x1xf32>
    %38 = vector.shape_cast %36 : vector<16x8xf32> to vector<16x1x8xf32>
    %39 = vector.broadcast %37 : vector<16x8x1xf32> to vector<16x8x8xf32>
    %40 = vector.broadcast %38 : vector<16x1x8xf32> to vector<16x8x8xf32>
    %41 = arith.mulf %39, %40 : vector<16x8x8xf32>
    %42 = vector.shape_cast %41 : vector<16x8x8xf32> to vector<16x64xf32>
    %c0_21 = arith.constant 0 : index
    %c0_22 = arith.constant 0 : index
    %43 = vector.load %arg8[%c0_21, %c0_22] : memref<16x64xf32, #tpu.memory_space<vmem>>, vector<16x64xf32>
    tpu.vector_store %arg8[%c0_21, %c0_22], %42 {strides = array<i32>} : memref<16x64xf32, #tpu.memory_space<vmem>>, vector<16x64xf32>,
    return
  }
  func.func @transform_0(%arg0: i32) -> (i32, i32) {
    %c0_i32 = arith.constant 0 : i32
    %c0_i32_0 = arith.constant 0 : i32
    return %arg0, %c0_i32 : i32, i32
  }
  func.func @transform_1(%arg0: i32) -> (i32, i32) {
    %c0_i32 = arith.constant 0 : i32
    %c0_i32_0 = arith.constant 0 : i32
    %c0_i32_1 = arith.constant 0 : i32
    return %c0_i32, %c0_i32_0 : i32, i32
  }
  func.func @transform_2(%arg0: i32) -> (i32, i32) {
    %c0_i32 = arith.constant 0 : i32
    %c0_i32_0 = arith.constant 0 : i32
    %c0_i32_1 = arith.constant 0 : i32
    return %c0_i32, %c0_i32_0 : i32, i32
  }
  func.func @transform_3(%arg0: i32) -> (i32, i32) {
    %c0_i32 = arith.constant 0 : i32
    %c0_i32_0 = arith.constant 0 : i32
    %c0_i32_1 = arith.constant 0 : i32
    return %c0_i32, %c0_i32_0 : i32, i32
  }
  func.func @transform_4(%arg0: i32) -> (i32, i32) {
    %c0_i32 = arith.constant 0 : i32
    %c0_i32_0 = arith.constant 0 : i32
    %c0_i32_1 = arith.constant 0 : i32
    return %c0_i32, %c0_i32_0 : i32, i32
  }
  func.func @transform_5(%arg0: i32) -> (i32, i32) {
    %c0_i32 = arith.constant 0 : i32
    %c0_i32_0 = arith.constant 0 : i32
    %c0_i32_1 = arith.constant 0 : i32
    return %c0_i32, %c0_i32_0 : i32, i32
  }
  func.func @transform_6(%arg0: i32) -> (i32, i32) {
    %c0_i32 = arith.constant 0 : i32
    %c0_i32_0 = arith.constant 0 : i32
    %c0_i32_1 = arith.constant 0 : i32
    return %c0_i32, %c0_i32_0 : i32, i32
  }
  func.func @transform_7(%arg0: i32) -> (i32, i32) {
    %c0_i32 = arith.constant 0 : i32
    %c0_i32_0 = arith.constant 0 : i32
    return %arg0, %c0_i32 : i32, i32
  }
}

</mosaic_0001>

<bundles_post_ra>
// kernel: tpu_custom_call.1
= control target key start
LH: loop header
LB: loop body
LE: loop exit
PB: predicated region body
PF: predicated region fallthrough
CT: control target
= control target key end

     0   :  { %s2402_s0 = inlined_call_operand.hbm [shape: f32[32,128], index: 0, kind: input, shape index: {}]   ;;  %s2403_s1 = inlined_call_operand.vmem [shape: bf16[128,128], index: 1, kind: input, shape index: {}]   ;;  %s2404_s2 = inlined_call_operand.vmem [shape: f32[1,128], index: 2, kind: input, shape index: {}]   ;;  %s2405_s3 = inlined_call_operand.hbm [shape: bf16[128,128], index: 3, kind: input, shape index: {}]   ;;  %s2406_s4 = inlined_call_operand.vmem [shape: f32[1,128], index: 4, kind: input, shape index: {}]   ;;  %s2407_s5 = inlined_call_operand.vmem [shape: bf16[128,16], index: 5, kind: input, shape index: {}]   ;;  %s2408_s6 = inlined_call_operand.vmem [shape: f32[1,16], index: 6, kind: input, shape index: {}]   ;;  %s2409_s7 = inlined_call_operand.hbm [shape: f32[32,64], index: 7, kind: output, shape index: {}]  }
   0x1   :  { %2414 = sst [smem:[#allocation11_spill]] %s2405_s3 }
   0x2   :  { %12 = vsyncpa [#allocation3], 0 }
   0x3   :  { %14 = vsyncpa [#allocation3 + $0x1], 0 }
   0x4   :  { %15 = vsyncpa [#allocation6], 0 }
   0x5   :  { %16 = vsyncpa [#allocation4], 0 }
   0x6   :  { %18 = vsyncpa [#allocation4 + $0x1], 0  ;;  %s1921_s24 = smov 0   ;;  %s1923_s25 = smov 0  }
   0x7   :  { %s1925_s26 = smov 0   ;;  %s1927_s27 = smov 0  }
   0x8 LB: > { %s1942_s28 = sadd.s32 4294967295, %s1858_s27   ;;  %s1497_s29 = sadd.s32 4294967294, %s1858_s27   ;;  %s1858_s27 = sphi %s1927_s27, %s2433_s27   ;;  %s1854_s26 = sphi %s1925_s26, %s2432_s26   ;;  %s1850_s25 = sphi %s1923_s25, %s2431_s25   ;;  %s1846_s24 = sphi %s1921_s24, %s2430_s24  }
   0x9   : > { %p44_p0 = scmp.ne.s32.totalorder %s1850_s25, %s1846_s24  ;;  %p2410_p1 = scmp.eq.s32.totalorder %s1942_s28, 0 }
   0xa   : > { %p200_p3 = scmp.eq.s32.totalorder %s1497_s29, 1  ;;  %p1498_p5 = scmp.ge.s32.totalorder %s1858_s27, 1 }
   0xb   : > { %p1951_p4 = por %p2410_p1, %p44_p0  ;;  %p207_p7 = scmp.lt.s32.totalorder %s1858_s27, 3 }
   0xc   : > { %p1956_p6 = por %p200_p3, %p44_p0  ;;  %s1860_s10 = smov [#allocation5]  }
   0xd   : > { %s2415_s30 = scalar_select %p1951_p4, 1, 0 }
   0xe   : > { %s2416_s8 = scalar_select %p1956_p6, 1, 0 }
   0xf   : > { %p1961_p8 = pnand %p1498_p5, %p207_p7  ;;  %s225_s11 = sshll.u32 %s1860_s10, 4  ;;  %s226_s11 = int_to_ptr.vmem [resolvable:$true] %s225_s11 }
  0x10   : > { %s1975_s13 = sadd.s32 1, %s1858_s27   ;;  %s31_s14 = sadd.s32 1, %s1854_s26 }
  0x11   : > { %s2417_s9 = scalar_select %p1961_p8, 1, 0 }
  0x12   : > { %p1637_p9 = pneg %p1961_p8  ;;  %s28_s15 = ssub.s32 %s1858_s27, %s1975_s13 }
  0x13   : > { %s1747_s16 = scalar_lea.vmem %s226_s11, 1024  ;;  %p1755_p5 = scmp.lt.s32.totalorder %s226_s11, %s226_s11 }
  0x14   : > { %p1970_p11 = pnand %p1637_p9, %p2410_p1  ;;  %p1748_p13 = scmp.ne.s32.totalorder %s226_s11, %s1747_s16 }
  0x15   : > { %p1756_p7 = scmp.lt.s32.totalorder %s1747_s16, %s1747_s16 }
  0x16   : > { %p1738_p12 = pneg %p1970_p11 }
  0x17   : > { %p1757_p10 = por %p1756_p7, %p1755_p5 }
  0x18   : > { %p1750_p0 = pnand %p1748_p13, %p1738_p12 }
  0x1a   : > { %p1751_p3 = pneg %p1750_p0 }
  0x1c   : > { %p1758_p2 = pnand %p1757_p10, %p1751_p3 }
  0x1e   : > { %1761 = shalt.err (!%p1758_p2)
}
  0x1f   : > { %s1861_s17 = smov 64   ;;  %s1862_s18 = smov 4  }
  0x20   : > { %s2419_s3 = sld [smem:[#allocation11_spill]]  ;;  %p29_p9 = scmp.eq.s32.totalorder %s28_s15, 0 }
  0x21   : > { %p38_p12 = scmp.ne.s32.totalorder %s1854_s26, %s1850_s25  ;;  %p39_p10 = scmp.eq.s32.totalorder %s1858_s27, 0 }
  0x22   : > { %p1650_p2 = scmp.lt.s32.totalorder %s1858_s27, 2  ;;  %p2420_p0 = scmp.eq.s32.totalorder %s1942_s28, 1 }
  0x23   : > { %s1992_s21 = scalar_select %p29_p9, %s1854_s26, %s31_s14  }
  0x24   : > { %p40_p13 = por %p39_p10, %p38_p12  ;;  %p1996_p3 = por %p2420_p0, %p38_p12 }
  0x25   : > { %s248_s23 = sand.u32 1, %s1854_s26   ;;  %s1540_s29 = sshll.u32 %s1858_s27, 8 }
  0x26   : > { %1640 = dma.hbm_to_vmem [thread:$0]  (!%p1970_p11), %s2419_s3, 1024, %s226_s11, [#allocation6], %s1861_s17, %s1861_s17, %s1862_s18  }
  0x27   : > { %s2421_s22 = scalar_select %p1996_p3, 1, 0 }
  0x28   : > { %s1501_s10 = sshll.u32 %s248_s23, 4  ;;  %s2005_s19 = scalar_lea.hbm %s2402_s0, %s1540_s29 }
  0x29   : > { %s252_s11 = scalar_lea.vmem [#allocation2], %s1501_s10  ;;  %p2007_p11 = pnand %p1650_p2, %p40_p13 }
  0x2a   : > { %s259_s14 = sshll.u32 %s252_s11, 4  ;;  %s2013_s17 = scalar_lea.sflag [#allocation3], %s248_s23  ;;  %s2011_s14 = int_to_ptr.vmem [resolvable:$true] %s259_s14 }
  0x2b   : > { %s1762_s18 = scalar_lea.hbm %s2005_s19, 256  ;;  %p1764_p7 = pneg %p2007_p11 }
  0x2c   : > { %p1763_p5 = scmp.ne.s32.totalorder %s2005_s19, %s1762_s18  ;;  %s1767_s10 = scalar_lea.hbm %s2402_s0, 512 }
  0x2d   : > { %p1768_p10 = scmp.lt.s32.totalorder %s2005_s19, %s2402_s0  ;;  %p1769_p2 = scmp.lt.s32.totalorder %s1767_s10, %s1762_s18 }
  0x2e   : > { %p1765_p9 = pnand %p1764_p7, %p1763_p5 }
  0x2f   : > { %p1770_p13 = por %p1769_p2, %p1768_p10 }
  0x30   : > { %p1766_p12 = pneg %p1765_p9 }
  0x32   : > { %p1771_p0 = pnand %p1770_p13, %p1766_p12 }
  0x34   : > { %1774 = shalt.err (!%p1771_p0)
}
  0x35   : > { %s1775_s23 = scalar_lea.vmem %s2011_s14, 256  ;;  %s1863_s11 = smov [#allocation2]  }
  0x36   : > { %p1776_p1 = scmp.ne.s32.totalorder %s2011_s14, %s1775_s23  ;;  %s1780_s3 = sshll.u32 %s1863_s11, 4  ;;  %s1781_s3 = int_to_ptr.vmem [resolvable:$false] %s1780_s3 }
  0x37   : > { %s1782_s20 = scalar_lea.vmem %s1781_s3, 512  ;;  %p1783_p9 = scmp.lt.s32.totalorder %s2011_s14, %s1781_s3 }
  0x38   : > { %p1778_p6 = pnand %p1776_p1, %p1764_p7  ;;  %p1784_p3 = scmp.lt.s32.totalorder %s1782_s20, %s1775_s23 }
  0x3a   : > { %p1779_p5 = pneg %p1778_p6  ;;  %p1785_p4 = por %p1784_p3, %p1783_p9 }
  0x3c   : > { %p1786_p8 = pnand %p1785_p4, %p1779_p5 }
  0x3e   : > { %1789 = shalt.err (!%p1786_p8)
}
  0x3f   : > { %s1864_s18 = smov 128   ;;  %s1865_s29 = smov 8  }
  0x40   : > { %1644 = dma.hbm_to_vmem [thread:$0]  (!%p2007_p11), %s2005_s19, 256, %s2011_s14, %s2013_s17, %s1864_s18, %s1864_s18, %s1865_s29  }
  0x41   : > { %p2423_p1 = scmp.ne.s32.totalorder %s2417_s9, 0 }
  0x42   : > { %s2037_s10 = sand.u32 (!%p2423_p1), 1, %s1850_s25   ;;  %p2424_p4 = scmp.ne.s32.totalorder (!%p2423_p1), %s2415_s30, 0 }
  0x43   : > { %271 = sbr.rel (%p2423_p1) target bundleno = 1177 (0x499), region = 48  ;;  %s1505_s3 = sshll.u32 (!%p2423_p1), %s2037_s10, 4 }
  0x44   : > { %s274_s12 = scalar_lea.sflag (!%p2423_p1), [#allocation3], %s2037_s10  ;;  %s2043_s16 = scalar_lea.vmem (!%p2423_p1), [#allocation2], %s1505_s3 }
  0x48   : > { %1833 = dma.done.wait (%p2424_p4), %s274_s12, 256  }
  0x49   : > { %1835 = vsyncadd (%p2424_p4), %s274_s12, 4294967040  ;;  %p2425_p6 = scmp.eq.s32.totalorder %s1942_s28, 0 }
  0x4b   : > { %1837 = dma.done.wait (%p2425_p6), [#allocation6], 1024   ;;  %p2426_p8 = pmov %p2425_p6 }
  0x4c   : > { %v1866_v0 = vmov 0.0   ;;  %vm1867_vm0 = vmmov 0   ;;  %v1704_v1 = vld [vmem:[%s2403_s1 + $0x38] sm:$0xff]   ;;  %v1705_v2 = vld [vmem:[%s2403_s1 + $0x30] sm:$0xff]   ;;  %v1706_v3 = vld [vmem:[%s2403_s1 + $0x28] sm:$0xff]   ;;  %s1869_s30 = smov 120  }
  0x4d   : > { %1839 = vsyncadd (%p2426_p8), [#allocation6], 4294966272  ;;  %1569 = vmatprep.subr.bf16.mxu0 %v1866_v0  ;;  %1585 = vmatprep.mubr.msk.bf16.mxu0 %vm1867_vm0, %v1866_v0  ;;  %v1707_v4 = vld [vmem:[%s2403_s1 + $0x20] sm:$0xff]   ;;  %v1712_v5 = vld [vmem:[#allocation5 + $0x38] sm:$0xff]   ;;  %s1872_s9 = smov 8   ;;  %s1873_s19 = smov 16  }
  0x4e   : > { %1589 = vmatprep.subr.bf16.mxu1 %v1866_v0  ;;  %1605 = vmatprep.mubr.msk.bf16.mxu1 %vm1867_vm0, %v1866_v0  ;;  %v1708_v6 = vld [vmem:[%s2403_s1 + $0x18] sm:$0xff]   ;;  %v1709_v7 = vld [vmem:[%s2403_s1 + $0x10] sm:$0xff]   ;;  %v1710_v8 = vld [vmem:[%s2403_s1 + $0x8] sm:$0xff]   ;;  %s1874_s14 = smov 24   ;;  %s1876_s15 = smov 40   ;;  %vm1376_vm1 = vcmask 64512  }
  0x4f   : > { %1570 = vmatpush3.bf16.msra.mxu0 %v1704_v1  ;;  %1590 = vmatpush3.bf16.msra.mxu1 %v1712_v5  ;;  %v1711_v9 = vld [vmem:[%s2403_s1] sm:$0xff]   ;;  %v316_v11 = vld [vmem:[%s2043_s16 + $0x8] sm:$0xff]  ;;  %v1713_v13 = vld [vmem:[#allocation5 + $0x30] sm:$0xff]   ;;  %v1868_v1 = vmov 1966171168   ;;  %s1877_s17 = smov 48  }
  0x50   : > { %1571 = vmatprep.subr.bf16.mxu0 %v1866_v0  ;;  %1591 = vmatprep.subr.bf16.mxu1 %v1866_v0  ;;  %v315_v10 = vld [vmem:[%s2043_s16] sm:$0xff]  ;;  %v1714_v14 = vld [vmem:[#allocation5 + $0x28] sm:$0xff]   ;;  %v1716_v16 = vld [vmem:[#allocation5 + $0x18] sm:$0xff]   ;;  %s1875_s16 = smov 32   ;;  %s1878_s23 = smov 56   ;;  %vm1379_vm2 = vcmask 130048  }
  0x51   : > { %v317_v12 = vpack.c.bf16 %v316_v11, %v315_v10  ;;  %v1715_v15 = vld [vmem:[#allocation5 + $0x20] sm:$0xff]   ;;  %v1717_v17 = vld [vmem:[#allocation5 + $0x10] sm:$0xff]   ;;  %v1718_v18 = vld [vmem:[#allocation5 + $0x8] sm:$0xff]   ;;  %vm1382_vm3 = vcmask 195584   ;;  %vm1385_vm4 = vcmask 261120   ;;  %vm1388_vm5 = vcmask 326656  }
  0x52   : > { %v1719_v19 = vld [vmem:[#allocation5] sm:$0xff]   ;;  %v1720_v20 = vld [vmem:[%s2407_s5 + $0x38] sm:$0xff]   ;;  %v1721_v39 = vld [vmem:[%s2407_s5 + $0x30] sm:$0xff]   ;;  %vm1391_vm6 = vcmask 392192   ;;  %vm1394_vm7 = vcmask 457728   ;;  %vm1397_vm8 = vcmask 523264  }
  0x53   : > { %1572 = vmatpush3.bf16.msra.mxu0 %v1705_v2  ;;  %1592 = vmatpush3.bf16.msra.mxu1 %v1713_v13  ;;  %v1508_v21 = vld [vmem:[%s2404_s2] ss:$0 sm:$0xff]  ;;  %v1722_v40 = vld [vmem:[%s2407_s5 + $0x28] sm:$0xff]   ;;  %v1724_v42 = vld [vmem:[%s2407_s5 + $0x18] sm:$0xff]   ;;  %v792_v2 = vunpack.c.l.s4 %v1868_v1  ;;  %s311_s11 = scalar_lea.vmem [#allocation7], %s1505_s3  ;;  %s1541_s18 = sshll.u32 %s1942_s28, 8 }
  0x54   : > { %1573 = vmatprep.subr.bf16.mxu0 %v1866_v0  ;;  %1593 = vmatprep.subr.bf16.mxu1 %v1866_v0  ;;  %v1723_v41 = vld [vmem:[%s2407_s5 + $0x20] sm:$0xff]   ;;  %v1725_v43 = vld [vmem:[%s2407_s5 + $0x10] sm:$0xff]   ;;  %v1726_v44 = vld [vmem:[%s2407_s5 + $0x8] sm:$0xff]   ;;  %s1414_s20 = sshll.u32 %s311_s11, 4  ;;  %s2356_s12 = scalar_lea.hbm %s2409_s7, %s1541_s18  ;;  %s2349_s20 = int_to_ptr.vmem [resolvable:$true] %s1414_s20 }
  0x55   : > { %v1727_v45 = vld [vmem:[%s2407_s5] sm:$0xff]   ;;  %s1401_s28 = scalar_lea.sflag [#allocation4], %s2037_s10  ;;  %p2427_p11 = scmp.ne.s32.totalorder %s2421_s22, 0 }
  0x56   : > { %v1517_v46 = vld [vmem:[%s2406_s4] ss:$0 sm:$0xff] }
  0x57   : > { %1574 = vmatpush3.bf16.msra.mxu0 %v1706_v3  ;;  %1594 = vmatpush3.bf16.msra.mxu1 %v1714_v14  ;;  %v1526_v5 = vld [vmem:[%s2408_s6] ss:$0 sm:$0xff] }
  0x58   : > { %1575 = vmatprep.subr.bf16.mxu0 %v1866_v0  ;;  %1595 = vmatprep.subr.bf16.mxu1 %v1866_v0 }
  0x5b   : > { %1576 = vmatpush3.bf16.msra.mxu0 %v1707_v4  ;;  %1596 = vmatpush3.bf16.msra.mxu1 %v1715_v15  ;;  %v793_v4 = vunpack.c.0.s8 %v792_v2 }
  0x5c   : > { %1577 = vmatprep.subr.bf16.mxu0 %v1866_v0  ;;  %1597 = vmatprep.subr.bf16.mxu1 %v1866_v0 }
  0x5f   : > { %1578 = vmatpush3.bf16.msra.mxu0 %v1708_v6  ;;  %1598 = vmatpush3.bf16.msra.mxu1 %v1716_v16 }
  0x60   : > { %1579 = vmatprep.subr.bf16.mxu0 %v1866_v0  ;;  %1599 = vmatprep.subr.bf16.mxu1 %v1866_v0 }
  0x63   : > { %1580 = vmatpush3.bf16.msra.mxu0 %v1709_v7  ;;  %1600 = vmatpush3.bf16.msra.mxu1 %v1717_v17 }
  0x64   : > { %1581 = vmatprep.subr.bf16.mxu0 %v1866_v0  ;;  %1601 = vmatprep.subr.bf16.mxu1 %v1866_v0 }
  0x67   : > { %1582 = vmatpush3.bf16.msra.mxu0 %v1710_v8  ;;  %1602 = vmatpush3.bf16.msra.mxu1 %v1718_v18 }
  0x68   : > { %1583 = vmatprep.subr.bf16.mxu0 %v1866_v0  ;;  %1603 = vmatprep.subr.bf16.mxu1 %v1866_v0 }
  0x6b   : > { %1584 = vmatpush3.bf16.msra.mxu0 %v1711_v9  ;;  %1604 = vmatpush3.bf16.msra.mxu1 %v1719_v19 }
  0x6c   : > { %1609 = vmatprep.subr.bf16.mxu0 %v1866_v0 }
  0x6e   : > { %1586 = vmatmul.mubr.bf16.vlgmr.msra.gmra.mxu0 %v317_v12 }
  0x6f   : > { %1625 = vmatprep.mubr.msk.bf16.mxu0 %vm1867_vm0, %v1866_v0  ;;  %1610 = vmatpush3.bf16.msra.mxu0 %v1720_v20 }
  0x70   : > { %1611 = vmatprep.subr.bf16.mxu0 %v1866_v0 }
  0x73   : > { %1612 = vmatpush3.bf16.msra.mxu0 %v1721_v39 }
  0x74   : > { %1613 = vmatprep.subr.bf16.mxu0 %v1866_v0 }
  0x77   : > { %1614 = vmatpush3.bf16.msra.mxu0 %v1722_v40 }
  0x78   : > { %1615 = vmatprep.subr.bf16.mxu0 %v1866_v0 }
  0x7b   : > { %1616 = vmatpush3.bf16.msra.mxu0 %v1723_v41 }
  0x7c   : > { %1617 = vmatprep.subr.bf16.mxu0 %v1866_v0 }
  0x7f   : > { %1618 = vmatpush3.bf16.msra.mxu0 %v1724_v42 }
  0x80   : > { %1619 = vmatprep.subr.bf16.mxu0 %v1866_v0 }
  0x83   : > { %1620 = vmatpush3.bf16.msra.mxu0 %v1725_v43 }
  0x84   : > { %1621 = vmatprep.subr.bf16.mxu0 %v1866_v0 }
  0x87   : > { %1622 = vmatpush3.bf16.msra.mxu0 %v1726_v44 }
  0x88   : > { %1623 = vmatprep.subr.bf16.mxu0 %v1866_v0  ;;  %v676_v0 = vlaneseq }
  0x8a   : > { %v2139_v3 = vshrl.u32 %v676_v0, 7 }
  0x8b   : > { %1624 = vmatpush3.bf16.msra.mxu0 %v1727_v45 }
  0x8c   : > { %v2145_v6 = vsub.s32 0, %v2139_v3  ;;  %v692_v7 = vsub.s32 2, %v2139_v3  ;;  %v796_v10 = vsub.s32 %v793_v4, %v2139_v3  ;;  %v699_v14 = vsub.s32 3, %v2139_v3 }
  0x8d   : > { %v685_v15 = vsub.s32 1, %v2139_v3  ;;  %v713_v17 = vsub.s32 5, %v2139_v3  ;;  %v706_v18 = vsub.s32 4, %v2139_v3 }
 0x12e   : > { %v423_v22 = vpop.f32.mrf.mxu0 }
 0x12f   : > { %v424_v23 = vadd.f32 %v1508_v21, %v423_v22 }
 0x130   : > { %v1587_v24 = vpop.f32.mrf.mxu0 }
 0x131   : > { %v432_v25 = vmul.f32 0.70710677, %v424_v23  ;;  %v430_v33 = vmul.f32 0.5, %v424_v23  ;;  %v727_v23 = vsub.s32 7, %v2139_v3  ;;  %v720_v24 = vsub.s32 6, %v2139_v3 }
 0x132   : > { %v426_v26 = vpop.f32.mrf.mxu0 }
 0x133   : > { %1728 = verf.f32 %v432_v25  ;;  %v427_v27 = vadd.f32 %v1508_v21, %v426_v26 }
 0x134   : > { %v1588_v28 = vpop.f32.mrf.mxu0 }
 0x135   : > { %v433_v29 = vmul.f32 0.70710677, %v427_v27  ;;  %v431_v34 = vmul.f32 0.5, %v427_v27 }
 0x137   : > { %1730 = verf.f32 %v433_v29 }
 0x140   : > { %v1729_v30 = vpop.eup %1728 }
 0x141   : > { %v436_v31 = vadd.f32 1.0, %v1729_v30 }
 0x143   : > { %v438_v36 = vmul.f32 %v436_v31, %v430_v33 }
 0x144   : > { %v1731_v32 = vpop.eup %1730 }
 0x145   : > { %v437_v35 = vadd.f32 1.0, %v1731_v32 }
 0x147   : > { %v439_v37 = vmul.f32 %v437_v35, %v431_v34 }
 0x149   : > { %v440_v38 = vpack.c.bf16 %v439_v37, %v438_v36 }
 0x14b   : > { %1606 = vmatmul.mubr.bf16.vlgmr.msra.gmra.mxu1 %v440_v38 }
 0x20b   : > { %v546_v47 = vpop.f32.mrf.mxu1 }
 0x20c   : > { %v547_v48 = vadd.f32 %v1517_v46, %v546_v47 }
 0x20d   : > { %v1607_v49 = vpop.f32.mrf.mxu1 }
 0x20e   : > { %v555_v50 = vmul.f32 0.70710677, %v547_v48  ;;  %v553_v58 = vmul.f32 0.5, %v547_v48 }
 0x20f   : > { %v549_v51 = vpop.f32.mrf.mxu1 }
 0x210   : > { %1732 = verf.f32 %v555_v50  ;;  %v550_v52 = vadd.f32 %v1517_v46, %v549_v51 }
 0x211   : > { %v1608_v53 = vpop.f32.mrf.mxu1 }
 0x212   : > { %v556_v54 = vmul.f32 0.70710677, %v550_v52  ;;  %v554_v59 = vmul.f32 0.5, %v550_v52 }
 0x214   : > { %1734 = verf.f32 %v556_v54 }
 0x21d   : > { %v1733_v55 = vpop.eup %1732 }
 0x21e   : > { %v559_v56 = vadd.f32 1.0, %v1733_v55 }
 0x220   : > { %v561_v61 = vmul.f32 %v559_v56, %v553_v58 }
 0x221   : > { %v1735_v57 = vpop.eup %1734 }
 0x222   : > { %v560_v60 = vadd.f32 1.0, %v1735_v57 }
 0x224   : > { %v562_v62 = vmul.f32 %v560_v60, %v554_v59 }
 0x226   : > { %v563_v63 = vpack.c.bf16 %v562_v62, %v561_v61 }
 0x228   : > { %1626 = vmatmul.mubr.bf16.vlgmr.msra.gmra.mxu0 %v563_v63 }
 0x2e8   : > { %v669_v8 = vpop.f32.mrf.mxu0 }
 0x2e9   : > { %v670_v9 = vadd.f32 %v1526_v5, %v669_v8 }
 0x2ea   : > { %v1627_v11 = vpop.f32.mrf.mxu0 }
 0x2eb   : > { %v693_v12 = vrot.slane %v670_v9, %v692_v7  ;;  %v679_v13 = vrot.slane %v670_v9, %v2145_v6  ;;  %v797_v19 = vrot.slane %v670_v9, %v796_v10  ;;  %v790_v20 = vcombine.high %v670_v9, %v670_v9 }
 0x2ec   : > { %v672_v16 = vpop.f32.mrf.mxu0  ;;  %v700_v25 = vrot.slane %v670_v9, %v699_v14  ;;  %v686_v26 = vrot.slane %v670_v9, %v685_v15  ;;  %v714_v27 = vrot.slane %v670_v9, %v713_v17  ;;  %v707_v28 = vrot.slane %v670_v9, %v706_v18 }
 0x2ed   : > { %695 = vbcast.lane.b32.xlu1 %v693_v12, 256  ;;  %681 = vbcast.lane.b32.xlu0 %v679_v13, 256  ;;  %v2156_v21 = vadd.f32 %v1526_v5, %v672_v16  ;;  %v2166_v29 = vrot.slane %v797_v19, %v796_v10  ;;  %v805_v30 = vcombine.high %v797_v19, %v797_v19 }
 0x2ee   : > { %v1628_v22 = vpop.f32.mrf.mxu0  ;;  %v804_v31 = vrot.slane %v790_v20, %v796_v10  ;;  %v728_v32 = vrot.slane %v670_v9, %v727_v23  ;;  %v721_v33 = vrot.slane %v670_v9, %v720_v24 }
 0x2ef   : > { %v846_v34 = vrot.slane %v2156_v21, %v796_v10  ;;  %v839_v35 = vcombine.high %v2156_v21, %v2156_v21  ;;  %v835_v36 = vcombine.high %v2166_v29, %v2166_v29  ;;  %v891_v37 = vrot.slane %v2166_v29, %v2145_v6 }
 0x2f0   : > { %v827_v38 = vrot.slane %v805_v30, %v796_v10  ;;  %v806_v39 = vcombine.high %v804_v31, %v804_v31  ;;  %v2179_v40 = vrot.slane %v804_v31, %v796_v10  ;;  %v742_v62 = vrot.slane %v2156_v21, %v685_v15 }
 0x2f1   : > { %702 = vbcast.lane.b32.xlu1 %v700_v25, 256  ;;  %688 = vbcast.lane.b32.xlu0 %v686_v26, 256  ;;  %v854_v41 = vcombine.high %v846_v34, %v846_v34  ;;  %v2181_v42 = vrot.slane %v846_v34, %v796_v10  ;;  %v853_v43 = vrot.slane %v839_v35, %v796_v10 }
 0x2f2   : > { %v899_v44 = vrot.slane %v835_v36, %v2145_v6  ;;  %v837_v45 = vcombine.high %v827_v38, %v827_v38  ;;  %v895_v46 = vrot.slane %v827_v38, %v2145_v6  ;;  %v834_v47 = vrot.slane %v806_v39, %v796_v10 }
 0x2f3   : > { %v907_v48 = vrot.slane %v2179_v40, %v2145_v6  ;;  %v836_v49 = vcombine.high %v2179_v40, %v2179_v40  ;;  %v2189_v50 = vrot.slane %v854_v41, %v796_v10  ;;  %v923_v52 = vrot.slane %v2181_v42, %v2145_v6 }
 0x2f4   : > { %v903_v51 = vrot.slane %v837_v45, %v2145_v6  ;;  %v884_v53 = vcombine.high %v2181_v42, %v2181_v42  ;;  %v855_v54 = vcombine.high %v853_v43, %v853_v43  ;;  %v911_v55 = vrot.slane %v834_v47, %v2145_v6 }
 0x2f5   : > { %716 = vbcast.lane.b32.xlu1 %v714_v27, 256  ;;  %709 = vbcast.lane.b32.xlu0 %v707_v28, 256  ;;  %v838_v56 = vcombine.high %v834_v47, %v834_v47  ;;  %v915_v57 = vrot.slane %v836_v49, %v2145_v6  ;;  %v927_v58 = vrot.slane %v2189_v50, %v2145_v6 }
 0x2f6   : > { %v886_v59 = vcombine.high %v2189_v50, %v2189_v50  ;;  %v931_v60 = vrot.slane %v884_v53, %v2145_v6  ;;  %v2203_v61 = vrot.slane %v855_v54, %v796_v10  ;;  %v869_v0 = vrot.slane %v853_v43, %v796_v10 }
 0x2f7   : > { %v919_v63 = vrot.slane %v838_v56, %v2145_v6  ;;  %v735_v1 = vrot.slane %v2156_v21, %v2145_v6  ;;  %v756_v12 = vrot.slane %v2156_v21, %v699_v14  ;;  %v749_v13 = vrot.slane %v2156_v21, %v692_v7 }
 0x2f8   : > { %v935_v2 = vrot.slane %v886_v59, %v2145_v6  ;;  %v943_v4 = vrot.slane %v2203_v61, %v2145_v6  ;;  %v887_v5 = vcombine.high %v2203_v61, %v2203_v61  ;;  %v939_v8 = vrot.slane %v869_v0, %v2145_v6 }
 0x2f9   : > { %730 = vbcast.lane.b32.xlu1 %v728_v32, 256  ;;  %723 = vbcast.lane.b32.xlu0 %v721_v33, 256  ;;  %v885_v9 = vcombine.high %v869_v0, %v869_v0  ;;  %v770_v15 = vrot.slane %v2156_v21, %v713_v17  ;;  %v763_v16 = vrot.slane %v2156_v21, %v706_v18  ;;  %v1871_v56 = vmov 1934713408  }
 0x2fa   : > { %v951_v11 = vrot.slane %v887_v5, %v2145_v6  ;;  %v784_v14 = vrot.slane %v2156_v21, %v727_v23  ;;  %v777_v7 = vrot.slane %v2156_v21, %v720_v24 }
 0x2fb   : > { %v947_v10 = vrot.slane %v885_v9, %v2145_v6 }
 0x2fd   : > { %744 = vbcast.lane.b32.xlu1 %v742_v62, 256  ;;  %737 = vbcast.lane.b32.xlu0 %v735_v1, 256 }
 0x301   : > { %758 = vbcast.lane.b32.xlu1 %v756_v12, 256  ;;  %751 = vbcast.lane.b32.xlu0 %v749_v13, 256 }
 0x305   : > { %772 = vbcast.lane.b32.xlu1 %v770_v15, 256  ;;  %765 = vbcast.lane.b32.xlu0 %v763_v16, 256 }
 0x309   : > { %786 = vbcast.lane.b32.xlu1 %v784_v14, 256  ;;  %779 = vbcast.lane.b32.xlu0 %v777_v7, 256 }
 0x35f   : > { %v696_v19 = vpop.permute.xlu1 %695  ;;  %v682_v20 = vpop.permute.xlu0 %681 }
 0x360   : > { %v968_v22 = vmul.f32 %v891_v37, %v682_v20  ;;  %v970_v25 = vmul.f32 %v899_v44, %v696_v19 }
 0x362   : > { %1000 = vrot.lane.b32.xlu0 %v968_v22, %s1869_s30 }
 0x363   : > { %v703_v17 = vpop.permute.xlu1 %702  ;;  %v689_v18 = vpop.permute.xlu0 %688 }
 0x364   : > { %v969_v26 = vmul.f32 %v895_v46, %v689_v18  ;;  %v971_v28 = vmul.f32 %v903_v51, %v703_v17  ;;  %v1870_v51 = vmov 1983009808  }
 0x366   : > { %1002 = vrot.lane.b32.xlu1 %v969_v26, %s1869_s30  ;;  %1004 = vrot.lane.b32.xlu0 %v970_v25, %s1869_s30 }
 0x367   : > { %v717_v23 = vpop.permute.xlu1 %716  ;;  %v710_v27 = vpop.permute.xlu0 %709 }
 0x368   : > { %v972_v21 = vmul.f32 %v907_v48, %v710_v27  ;;  %v973_v30 = vmul.f32 %v911_v55, %v717_v23 }
 0x36a   : > { %1006 = vrot.lane.b32.xlu1 %v971_v28, %s1869_s30  ;;  %1008 = vrot.lane.b32.xlu0 %v972_v21, %s1869_s30 }
 0x36b   : > { %v731_v24 = vpop.permute.xlu1 %730  ;;  %v724_v29 = vpop.permute.xlu0 %723 }
 0x36c   : > { %v974_v31 = vmul.f32 %v915_v57, %v724_v29  ;;  %v975_v34 = vmul.f32 %v919_v63, %v731_v24  ;;  %v1115_v57 = vunpack.c.l.s4 %v1871_v56 }
 0x36e   : > { %1010 = vrot.lane.b32.xlu1 %v973_v30, %s1869_s30  ;;  %1012 = vrot.lane.b32.xlu0 %v974_v31, %s1869_s30  ;;  %v1116_v63 = vunpack.c.0.s8 %v1115_v57 }
 0x36f   : > { %v745_v32 = vpop.permute.xlu1 %744  ;;  %v738_v33 = vpop.permute.xlu0 %737 }
 0x370   : > { %v976_v35 = vmul.f32 %v923_v52, %v738_v33  ;;  %v977_v38 = vmul.f32 %v927_v58, %v745_v32  ;;  %v1051_v52 = vunpack.c.l.s4 %v1870_v51  ;;  %v2262_v9 = vsub.s32 %v1116_v63, %v2139_v3 }
 0x372   : > { %1014 = vrot.lane.b32.xlu1 %v975_v34, %s1869_s30  ;;  %1016 = vrot.lane.b32.xlu0 %v976_v35, %s1869_s30  ;;  %v1052_v55 = vunpack.c.0.s8 %v1051_v52 }
 0x373   : > { %v759_v36 = vpop.permute.xlu1 %758  ;;  %v752_v37 = vpop.permute.xlu0 %751 }
 0x374   : > { %v978_v39 = vmul.f32 %v931_v60, %v752_v37  ;;  %v979_v43 = vmul.f32 %v935_v2, %v759_v36  ;;  %v2255_v61 = vsub.s32 %v1052_v55, %v2139_v3 }
 0x376   : > { %1018 = vrot.lane.b32.xlu1 %v977_v38, %s1869_s30  ;;  %1020 = vrot.lane.b32.xlu0 %v978_v39, %s1869_s30 }
 0x377   : > { %v773_v40 = vpop.permute.xlu1 %772  ;;  %v766_v41 = vpop.permute.xlu0 %765 }
 0x378   : > { %v980_v44 = vmul.f32 %v939_v8, %v766_v41  ;;  %v981_v42 = vmul.f32 %v943_v4, %v773_v40 }
 0x37a   : > { %1022 = vrot.lane.b32.xlu1 %v979_v43, %s1869_s30  ;;  %1024 = vrot.lane.b32.xlu0 %v980_v44, %s1869_s30 }
 0x37b   : > { %v780_v6 = vpop.permute.xlu0 %779  ;;  %v787_v46 = vpop.permute.xlu1 %786 }
 0x37c   : > { %v982_v45 = vmul.f32 %v947_v10, %v780_v6  ;;  %v983_v47 = vmul.f32 %v951_v11, %v787_v46 }
 0x37e   : > { %1026 = vrot.lane.b32.xlu1 %v981_v42, %s1869_s30  ;;  %1028 = vrot.lane.b32.xlu0 %v982_v45, %s1869_s30 }
 0x382   : > { %1030 = vrot.lane.b32.xlu1 %v983_v47, %s1869_s30  ;;  %s1790_s30 = scalar_lea.vmem %s2349_s20, 256 }
 0x383   : > { %p1791_p3 = scmp.ne.s32.totalorder %s2349_s20, %s1790_s30 }
 0x385   : > { %p1792_p7 = pnand %p1791_p3, %p2427_p11 }
 0x387   : > { %p1793_p12 = pneg %p1792_p7 }
 0x3d4   : > { %v1001_v48 = vpop.permute.xlu0 %1000 }
 0x3d8   : > { %v1003_v49 = vpop.permute.xlu1 %1002  ;;  %v1005_v50 = vpop.permute.xlu0 %1004 }
 0x3d9   : > { %v1048_v62 = vcombine.low %v1001_v48, %v1005_v50  ;;  %v1049_v26 = vcombine.high %v1001_v48, %v1005_v50 }
 0x3db   : > { %v1056_v5 = vrot.slane %v1048_v62, %v2255_v61  ;;  %v1063_v34 = vrot.slane %v1049_v26, %v2255_v61 }
 0x3dc   : > { %v1007_v53 = vpop.permute.xlu1 %1006  ;;  %v1009_v54 = vpop.permute.xlu0 %1008 }
 0x3dd   : > { %v1064_v58 = vcombine.low %v1003_v49, %v1007_v53  ;;  %v1065_v19 = vcombine.high %v1003_v49, %v1007_v53 }
 0x3df   : > { %v1072_v0 = vrot.slane %v1064_v58, %v2255_v61  ;;  %v1079_v21 = vrot.slane %v1065_v19, %v2255_v61 }
 0x3e0   : > { %v1011_v59 = vpop.permute.xlu1 %1010  ;;  %v1013_v60 = vpop.permute.xlu0 %1012 }
 0x3e1   : > { %v1080_v1 = vcombine.low %v1009_v54, %v1013_v60  ;;  %v1112_v11 = vcombine.low %v1056_v5, %v1072_v0  ;;  %v1113_v20 = vcombine.high %v1056_v5, %v1072_v0  ;;  %v1081_v22 = vcombine.high %v1009_v54, %v1013_v60 }
 0x3e2   : > { %v1128_v38 = vcombine.low %v1063_v34, %v1079_v21  ;;  %v1129_v54 = vcombine.high %v1063_v34, %v1079_v21 }
 0x3e3   : > { %v1088_v10 = vrot.slane %v1080_v1, %v2255_v61  ;;  %v2271_v17 = vrot.slane %v1112_v11, %v2262_v9  ;;  %v1095_v24 = vrot.slane %v1081_v22, %v2255_v61  ;;  %v1127_v30 = vrot.slane %v1113_v20, %v2262_v9 }
 0x3e4   : > { %v1015_v2 = vpop.permute.xlu1 %1014  ;;  %v2258_v4 = vpop.permute.xlu0 %1016  ;;  %v1136_v48 = vrot.slane %v1128_v38, %v2262_v9  ;;  %v1143_v5 = vrot.slane %v1129_v54, %v2262_v9 }
 0x3e5   : > { %v1096_v8 = vcombine.low %v1011_v59, %v1015_v2  ;;  %v1097_v16 = vcombine.high %v1011_v59, %v1015_v2 }
 0x3e7   : > { %v1104_v12 = vrot.slane %v1096_v8, %v2255_v61  ;;  %v1111_v23 = vrot.slane %v1097_v16, %v2255_v61 }
 0x3e8   : > { %v2266_v13 = vpop.permute.xlu1 %1018  ;;  %v2268_v15 = vpop.permute.xlu0 %1020 }
 0x3e9   : > { %v1144_v14 = vcombine.low %v1088_v10, %v1104_v12  ;;  %v1145_v7 = vcombine.high %v1088_v10, %v1104_v12  ;;  %v1160_v35 = vcombine.low %v1095_v24, %v1111_v23  ;;  %v1184_v36 = vcombine.low %v2258_v4, %v2268_v15 }
 0x3ea   : > { %v1161_v49 = vcombine.high %v1095_v24, %v1111_v23  ;;  %v1185_v60 = vcombine.high %v2258_v4, %v2268_v15 }
 0x3eb   : > { %v2274_v3 = vrot.slane %v1144_v14, %v2262_v9  ;;  %v1159_v28 = vrot.slane %v1145_v7, %v2262_v9  ;;  %v1192_v43 = vrot.slane %v1184_v36, %v2255_v61  ;;  %v1168_v42 = vrot.slane %v1160_v35, %v2262_v9 }
 0x3ec   : > { %v1023_v18 = vpop.permute.xlu1 %1022  ;;  %v1025_v25 = vpop.permute.xlu0 %1024  ;;  %v1175_v62 = vrot.slane %v1161_v49, %v2262_v9  ;;  %v1199_v12 = vrot.slane %v1185_v60, %v2255_v61 }
 0x3ed   : > { %v1177_v27 = vcombine.high %v2271_v17, %v2274_v3  ;;  %v1200_v29 = vcombine.low %v2266_v13, %v1023_v18  ;;  %v1176_v31 = vcombine.low %v2271_v17, %v2274_v3  ;;  %v1178_v37 = vcombine.low %v1127_v30, %v1159_v28 }
 0x3ee   : > { %v1179_v6 = vcombine.high %v1127_v30, %v1159_v28  ;;  %v1180_v53 = vcombine.low %v1136_v48, %v1168_v42  ;;  %v1201_v55 = vcombine.high %v2266_v13, %v1023_v18  ;;  %v1181_v0 = vcombine.high %v1136_v48, %v1168_v42 }
 0x3ef   : > { %1322 = vrot.lane.b32.xlu0 %v1177_v27, %s1872_s9  ;;  %v1208_v39 = vrot.slane %v1200_v29, %v2255_v61  ;;  %v1182_v15 = vcombine.low %v1143_v5, %v1175_v62  ;;  %v1183_v7 = vcombine.high %v1143_v5, %v1175_v62 }
 0x3f0   : > { %v1027_v32 = vpop.permute.xlu1 %1026  ;;  %v1029_v33 = vpop.permute.xlu0 %1028  ;;  %v1215_v11 = vrot.slane %v1201_v55, %v2255_v61 }
 0x3f1   : > { %v1216_v40 = vcombine.low %v1025_v25, %v1029_v33  ;;  %v1248_v45 = vcombine.low %v1192_v43, %v1208_v39  ;;  %v1249_v56 = vcombine.high %v1192_v43, %v1208_v39  ;;  %v1217_v57 = vcombine.high %v1025_v25, %v1029_v33 }
 0x3f2   : > { %v1264_v14 = vcombine.low %v1199_v12, %v1215_v11  ;;  %v1265_v25 = vcombine.high %v1199_v12, %v1215_v11 }
 0x3f3   : > { %1330 = vrot.lane.b32.xlu0 %v1178_v37, %s1873_s19  ;;  %v1224_v46 = vrot.slane %v1216_v40, %v2255_v61  ;;  %v2301_v58 = vrot.slane %v1248_v45, %v2262_v9  ;;  %v1231_v10 = vrot.slane %v1217_v57, %v2255_v61  ;;  %v1263_v4 = vrot.slane %v1249_v56, %v2262_v9 }
 0x3f4   : > { %v1031_v41 = vpop.permute.xlu1 %1030  ;;  %v1272_v22 = vrot.slane %v1264_v14, %v2262_v9  ;;  %v1279_v27 = vrot.slane %v1265_v25, %v2262_v9 }
 0x3f5   : > { %v1232_v44 = vcombine.low %v1027_v32, %v1031_v41  ;;  %v1233_v50 = vcombine.high %v1027_v32, %v1031_v41 }
 0x3f7   : > { %v1240_v47 = vrot.slane %v1232_v44, %v2255_v61  ;;  %1338 = vrot.lane.b32.xlu0 %v1179_v6, %s1874_s14  ;;  %v1247_v63 = vrot.slane %v1233_v50, %v2255_v61 }
 0x3f9   : > { %v1280_v51 = vcombine.low %v1224_v46, %v1240_v47  ;;  %v1281_v52 = vcombine.high %v1224_v46, %v1240_v47  ;;  %v1296_v13 = vcombine.low %v1231_v10, %v1247_v63  ;;  %v1297_v18 = vcombine.high %v1231_v10, %v1247_v63 }
 0x3fb   : > { %1346 = vrot.lane.b32.xlu0 %v1180_v53, %s1875_s16  ;;  %v2304_v59 = vrot.slane %v1280_v51, %v2262_v9  ;;  %v1295_v2 = vrot.slane %v1281_v52, %v2262_v9  ;;  %v1304_v20 = vrot.slane %v1296_v13, %v2262_v9  ;;  %v1311_v23 = vrot.slane %v1297_v18, %v2262_v9 }
 0x3fd   : > { %v1313_v1 = vcombine.high %v2301_v58, %v2304_v59  ;;  %v1312_v8 = vcombine.low %v2301_v58, %v2304_v59  ;;  %v1314_v16 = vcombine.low %v1263_v4, %v1295_v2  ;;  %v1315_v19 = vcombine.high %v1263_v4, %v1295_v2 }
 0x3fe   : > { %v1316_v61 = vcombine.low %v1272_v22, %v1304_v20  ;;  %v1317_v26 = vcombine.high %v1272_v22, %v1304_v20  ;;  %v1318_v28 = vcombine.low %v1279_v27, %v1311_v23  ;;  %v1319_v21 = vcombine.high %v1279_v27, %v1311_v23 }
 0x3ff   : > { %1354 = vrot.lane.b32.xlu0 %v1181_v0, %s1876_s15  ;;  %1324 = vrot.lane.b32.xlu1 %v1313_v1, %s1872_s9 }
 0x403   : > { %1362 = vrot.lane.b32.xlu0 %v1182_v15, %s1877_s17  ;;  %1332 = vrot.lane.b32.xlu1 %v1314_v16, %s1873_s19  ;;  %s1879_s19 = smov [#allocation7]  }
 0x407   : > { %1370 = vrot.lane.b32.xlu0 %v1183_v7, %s1878_s23  ;;  %1340 = vrot.lane.b32.xlu1 %v1315_v19, %s1874_s14  ;;  %s1794_s14 = sshll.u32 %s1879_s19, 4  ;;  %s1795_s14 = int_to_ptr.vmem [resolvable:$false] %s1794_s14 }
 0x408   : > { %p1797_p10 = scmp.lt.s32.totalorder %s2349_s20, %s1795_s14 }
 0x40b   : > { %1348 = vrot.lane.b32.xlu1 %v1316_v61, %s1875_s16  ;;  %s1796_s16 = scalar_lea.vmem %s1795_s14, 512 }
 0x40c   : > { %p1798_p2 = scmp.lt.s32.totalorder %s1796_s16, %s1790_s30 }
 0x40e   : > { %p1799_p13 = por %p1798_p2, %p1797_p10 }
 0x40f   : > { %1356 = vrot.lane.b32.xlu1 %v1317_v26, %s1876_s15 }
 0x410   : > { %p1800_p0 = pnand %p1799_p13, %p1793_p12 }
 0x413   : > { %1364 = vrot.lane.b32.xlu1 %v1318_v28, %s1877_s17 }
 0x417   : > { %1372 = vrot.lane.b32.xlu1 %v1319_v21, %s1878_s23 }
 0x461   : > { %v1323_v24 = vpop.permute.xlu0 %1322 }
 0x462   : > { %v1377_v35 = vsel %vm1376_vm1, %v1176_v31, %v1323_v24 }
 0x465   : > { %v1331_v29 = vpop.permute.xlu0 %1330 }
 0x466   : > { %v1380_v9 = vsel %vm1379_vm2, %v1377_v35, %v1331_v29 }
 0x469   : > { %v1339_v30 = vpop.permute.xlu0 %1338 }
 0x46a   : > { %v1383_v38 = vsel %vm1382_vm3, %v1380_v9, %v1339_v30 }
 0x46d   : > { %v1347_v32 = vpop.permute.xlu0 %1346 }
 0x46e   : > { %v1386_v39 = vsel %vm1385_vm4, %v1383_v38, %v1347_v32 }
 0x471   : > { %v1325_v33 = vpop.permute.xlu1 %1324  ;;  %v1355_v34 = vpop.permute.xlu0 %1354 }
 0x472   : > { %v1389_v40 = vsel %vm1388_vm5, %v1386_v39, %v1355_v34  ;;  %v1378_v6 = vsel %vm1376_vm1, %v1312_v8, %v1325_v33 }
 0x475   : > { %v1333_v36 = vpop.permute.xlu1 %1332  ;;  %v1363_v37 = vpop.permute.xlu0 %1362 }
 0x476   : > { %v1392_v17 = vsel %vm1391_vm6, %v1389_v40, %v1363_v37  ;;  %v1381_v42 = vsel %vm1379_vm2, %v1378_v6, %v1333_v36 }
 0x479   : > { %v1341_v3 = vpop.permute.xlu1 %1340  ;;  %v1371_v31 = vpop.permute.xlu0 %1370 }
 0x47a   : > { %v1395_v41 = vsel %vm1394_vm7, %v1392_v17, %v1371_v31  ;;  %v1384_v46 = vsel %vm1382_vm3, %v1381_v42, %v1341_v3 }
 0x47b   : > { %1398 = vst.msk [vmem:[%s311_s11] sm:$0xff] %vm1397_vm8, %v1395_v41 }
 0x47d   : > { %v1349_v43 = vpop.permute.xlu1 %1348 }
 0x47e   : > { %v1387_v47 = vsel %vm1385_vm4, %v1384_v46, %v1349_v43 }
 0x481   : > { %v1357_v44 = vpop.permute.xlu1 %1356 }
 0x482   : > { %v1390_v48 = vsel %vm1388_vm5, %v1387_v47, %v1357_v44 }
 0x485   : > { %v1365_v45 = vpop.permute.xlu1 %1364 }
 0x486   : > { %v1393_v49 = vsel %vm1391_vm6, %v1390_v48, %v1365_v45 }
 0x489   : > { %v1373_v50 = vpop.permute.xlu1 %1372 }
 0x48a   : > { %v1396_v51 = vsel %vm1394_vm7, %v1393_v49, %v1373_v50 }
 0x48b   : > { %1399 = vst.msk [vmem:[%s311_s11 + $0x8] sm:$0xff] %vm1397_vm8, %v1396_v51 }
 0x48c   : > { %1803 = shalt.err (!%p1800_p0)
}
 0x48d   : > { %s1804_s15 = scalar_lea.hbm %s2356_s12, 256  ;;  %s1808_s11 = scalar_lea.hbm %s2409_s7, 512 }
 0x48e   : > { %p1805_p5 = scmp.ne.s32.totalorder %s2356_s12, %s1804_s15  ;;  %p1809_p4 = scmp.lt.s32.totalorder %s2356_s12, %s2409_s7 }
 0x48f   : > { %p1810_p6 = scmp.lt.s32.totalorder %s1808_s11, %s1804_s15 }
 0x490   : > { %p1806_p9 = pnand %p1805_p5, %p2427_p11 }
 0x491   : > { %p1811_p8 = por %p1810_p6, %p1809_p4 }
 0x492   : > { %p1807_p1 = pneg %p1806_p9 }
 0x494   : > { %p1812_p3 = pnand %p1811_p8, %p1807_p1 }
 0x496   : > { %1815 = shalt.err (!%p1812_p3)
}
 0x497   : > { %s1880_s29 = smov 128  }
 0x498   : > { %1635 = dma.vmem_to_hbm [thread:$0]  (%p2427_p11), %s2349_s20, 256, %s2356_s12, %s1401_s28, %s1880_s29, %s1880_s29, %s1872_s9  }
 0x499 PF: > { %s1429_s30 = sand.u32 1, %s1846_s24   ;;  %p2428_p7 = scmp.ne.s32.totalorder %s2416_s8, 0 }
 0x49a   : > { %p2429_p12 = scmp.ge.s32.totalorder %s1858_s27, 2  ;;  %s1430_s19 = scalar_lea.sflag [#allocation4], %s1429_s30 }
 0x49c   : > { %p1646_p10 = pnand %p2429_p12, %p2428_p7 }
 0x49e   : > { %p1647_p2 = pneg %p1646_p10 }
 0x4a0   : > { %1841 = dma.done.wait (%p1647_p2), %s1430_s19, 256  }
 0x4a1   : > { %1843 = vsyncadd (%p1647_p2), %s1430_s19, 4294967040  ;;  %p21_p13 = scmp.ge.s32.totalorder %s1975_s13, 4   ;;  %s2430_s24 = smov %s1850_s25 }
 0x4a2   : > { %s2431_s25 = smov %s1854_s26  ;;  %s2432_s26 = smov %s1992_s21 }
 0x4a3   : > { %s2433_s27 = smov %s1975_s13  ;;  %23 = sbr.rel (!%p21_p13) target bundleno = 8 (0x8), region = 97 }
 0x4a8   :  { %1435 = vsyncpa [#allocation3], 1 }
 0x4a9   :  { %1437 = vsyncpa [#allocation3 + $0x1], 1 }
 0x4aa   :  { %1438 = vsyncpa [#allocation6], 1 }
 0x4ab   :  { %1439 = vsyncpa [#allocation4], 1 }
 0x4ac   :  { %1441 = vsyncpa [#allocation4 + $0x1], 1 }

</bundles_post_ra>
